<compile_context>
chip_gen: v5e
topology: v5e:2x2
jax: 0.10.0
libtpu: 0.0.40
codegen_flags: <defaults>
</compile_context>

<pallas_src>
import jax
import jax.numpy as jnp
from jax.experimental import pallas as pl
from jax.experimental.pallas import tpu as pltpu


# ---------------------------------------------------------------------------
# Kernels
# ---------------------------------------------------------------------------
def _stats_kernel(x_ref, w_ref, sum_ref, ssq_ref):
    """Per-batch partial sum / sum-of-squares of z = W @ relu(x).

    x_ref:   (Cin, TM)   native dtype (leading batch dim squeezed)
    w_ref:   (Cout, Cin) native dtype
    sum_ref: (Cout, 1)   f32, resident accumulator across the tile axis
    ssq_ref: (Cout, 1)   f32
    """
    @pl.when(pl.program_id(1) == 0)
    def _init():
        sum_ref[...] = jnp.zeros_like(sum_ref)
        ssq_ref[...] = jnp.zeros_like(ssq_ref)

    x = jnp.maximum(x_ref[...], 0)                                # ReLU, native dtype
    z = jnp.dot(w_ref[...], x, preferred_element_type=jnp.float32)  # (Cout, TM) f32
    sum_ref[...] += jnp.sum(z, axis=1, keepdims=True)
    ssq_ref[...] += jnp.sum(z * z, axis=1, keepdims=True)


def _norm_kernel(x_ref, w_ref, shift_ref, o_ref):
    """out = (scale*W) @ relu(x) + shift  -- scale already folded into W.

    x_ref:     (Cin, TM)   native dtype
    w_ref:     (Cout, Cin) native dtype (BN scale folded in)
    shift_ref: (Cout, 1)   f32
    o_ref:     (Cout, TM)  output dtype, lane-dense (TM multiple of 128)
    """
    x = jnp.maximum(x_ref[...], 0)
    z = jnp.dot(w_ref[...], x, preferred_element_type=jnp.float32)
    o_ref[...] = (z + shift_ref[...]).astype(o_ref.dtype)


# ---------------------------------------------------------------------------
# Wrapper
# ---------------------------------------------------------------------------
def _physical_vmem_bytes():
    """Per-core VMEM capacity; conservative 64 MiB (v7x) fallback."""
    try:
        info = pltpu.get_tpu_info()
        v = int(getattr(info, "vmem_capacity_bytes", 0))
        if v > 0:
            return v
    except Exception:
        pass
    return 64 * 1024 * 1024


def _pick_tile(hw128, cin, cout, itemsize, vmem_bytes):
    """Largest 128-multiple spatial tile that fits a byte budget.

    Per-column live VMEM in the heavier (normalize) pass:
      2x double-buffered x block + 2x double-buffered out block
      + f32 z temp + one extra native row of slack for compiler temps.
    """
    per_col = (2 * cin + 2 * cout + cin) * itemsize + 4 * cout
    budget = int(vmem_bytes * 0.4)          # leave headroom for weights/temps
    cols_by_budget = max(budget // per_col, 128)
    # Past a few MiB of x block the ~0.35us per-grid-step overhead is amortized.
    cols_by_target = max((8 * 1024 * 1024) // (cin * itemsize), 512)
    tile = min(hw128, cols_by_budget, cols_by_target)
    return max(128, (tile // 128) * 128)


def block1x1(x_nchw, conv_w, conv_b, bn_gamma, bn_beta, *, eps=1e-5):
    """ReLU -> Conv2d(1x1, bias) -> BatchNorm2d (training-mode batch stats).

    x_nchw:   (N, Cin, H, W)
    conv_w:   (Cout, Cin, 1, 1)
    conv_b:   (Cout,)  -- cancelled exactly by the following training-mode BN.
    bn_gamma: (Cout,)
    bn_beta:  (Cout,)
    """
    del conv_b  # mean(y + b) = mean(y) + b, so BN removes the bias exactly.

    N, Cin, H, W = x_nchw.shape
    Cout = conv_w.shape[0]
    HW = H * W
    M = N * HW                        # true per-channel element count for BN

    dtype = x_nchw.dtype
    itemsize = jnp.dtype(dtype).itemsize
    phys_vmem = _physical_vmem_bytes()
    vmem_limit = int(phys_vmem * 0.7)

    # NCHW kept as (N, Cin, HW): channels on sublanes, spatial on lanes, so the
    # 1x1 conv is a plain (Cout,Cin)@(Cin,HW) matmul with lane-dense outputs.
    hw128 = ((HW + 127) // 128) * 128
    tile = _pick_tile(hw128, Cin, Cout, itemsize, phys_vmem)
    HWp = ((HW + tile - 1) // tile) * tile
    num_tiles = HWp // tile
    grid = (N, num_tiles)

    x3 = x_nchw.reshape(N, Cin, HW)
    if HWp != HW:
        # Zero padding: relu(0)=0 -> z=0, contributes nothing to sum/ssq.
        x3 = jnp.pad(x3, ((0, 0), (0, 0), (0, HWp - HW)))

    w2 = conv_w.reshape(Cout, Cin)
    w2_native = w2.astype(dtype)      # native-dtype operands -> full-rate MXU

    x_spec = pl.BlockSpec((None, Cin, tile), lambda n, t: (n, 0, t))
    w_spec = pl.BlockSpec((Cout, Cin), lambda n, t: (0, 0))
    stat_spec = pl.BlockSpec((None, Cout, 1), lambda n, t: (n, 0, 0))
    shift_spec = pl.BlockSpec((Cout, 1), lambda n, t: (0, 0))
    out_spec = pl.BlockSpec((None, Cout, tile), lambda n, t: (n, 0, t))

    # ---- Pass 1: per-batch partial stats (batch axis parallel -> both TCs
    # on v7x stream this pass; tile axis is the resident-accumulator axis). --
    sums, ssqs = pl.pallas_call(
        _stats_kernel,
        out_shape=(jax.ShapeDtypeStruct((N, Cout, 1), jnp.float32),
                   jax.ShapeDtypeStruct((N, Cout, 1), jnp.float32)),
        grid=grid,
        in_specs=[x_spec, w_spec],
        out_specs=(stat_spec, stat_spec),
        compiler_params=pltpu.CompilerParams(
            dimension_semantics=("parallel", "arbitrary"),
            vmem_limit_bytes=vmem_limit),
    )(x3, w2_native)

    # ---- Tiny combine + BN finalize in plain JAX (O(Cout) work). -----------
    ch_sum = jnp.sum(sums, axis=0)                      # (Cout, 1) f32
    ch_ssq = jnp.sum(ssqs, axis=0)                      # (Cout, 1) f32
    mean = ch_sum / M
    var = jnp.maximum(ch_ssq / M - mean * mean, 0.0)
    gamma = bn_gamma.astype(jnp.float32).reshape(Cout, 1)
    beta = bn_beta.astype(jnp.float32).reshape(Cout, 1)
    scale = gamma * jax.lax.rsqrt(var + eps)            # (Cout, 1)
    shift = beta - mean * scale                         # (Cout, 1)
    # Fold BN scale into the conv weights: pass 2 is just W'@relu(x) + shift.
    w_scaled = (scale * w2.astype(jnp.float32)).astype(dtype)

    # ---- Pass 2: re-stream x, apply folded conv+BN, lane-dense stores. -----
    out3 = pl.pallas_call(
        _norm_kernel,
        out_shape=jax.ShapeDtypeStruct((N, Cout, HWp), dtype),
        grid=grid,
        in_specs=[x_spec, w_spec, shift_spec],
        out_specs=out_spec,
        compiler_params=pltpu.CompilerParams(
            dimension_semantics=("parallel", "parallel"),
            vmem_limit_bytes=vmem_limit),
    )(x3, w_scaled, shift)

    if HWp != HW:
        out3 = out3[:, :, :HW]
    return out3.reshape(N, Cout, H, W)


# ---------------------------------------------------------------------------
# Pure-JAX reference (matches the PyTorch forward, incl. the conv bias).
# ---------------------------------------------------------------------------
def _reference(x_nchw, conv_w, conv_b, bn_gamma, bn_beta, *, eps=1e-5):
    x = jnp.maximum(x_nchw, 0.0)
    w2 = conv_w.reshape(conv_w.shape[0], conv_w.shape[1])
    y = jnp.einsum("nchw,oc->nohw", x, w2, precision="highest")
    y = y + conv_b[None, :, None, None]
    mean = jnp.mean(y, axis=(0, 2, 3), keepdims=True)
    var = jnp.mean((y - mean) ** 2, axis=(0, 2, 3), keepdims=True)
    yn = (y - mean) / jnp.sqrt(var + eps)
    return yn * bn_gamma[None, :, None, None] + bn_beta[None, :, None, None]


if __name__ == "__main__":
    key = jax.random.PRNGKey(0)
    k_x, k_w, k_b, k_g, k_be = jax.random.split(key, 5)

    N, Cin, H, W = 2, 4, 16, 16
    Cout = 8  # middle_channels is unused by Block1x1

    x = jax.random.normal(k_x, (N, Cin, H, W), dtype=jnp.float32)
    conv_w = jax.random.normal(k_w, (Cout, Cin, 1, 1), dtype=jnp.float32) * 0.1
    conv_b = jax.random.normal(k_b, (Cout,), dtype=jnp.float32) * 0.05
    bn_gamma = 1.0 + 0.1 * jax.random.normal(k_g, (Cout,), dtype=jnp.float32)
    bn_beta = 0.1 * jax.random.normal(k_be, (Cout,), dtype=jnp.float32)

    out = jax.block_until_ready(block1x1(x, conv_w, conv_b, bn_gamma, bn_beta))

    ref = _reference(x, conv_w, conv_b, bn_gamma, bn_beta)
    assert out.shape == (N, Cout, H, W), out.shape
    err = float(jnp.max(jnp.abs(out - ref)))
    assert jnp.allclose(out, ref, atol=1e-3, rtol=1e-3), f"max abs err = {err}"

    print("KERNEL_OK")
</pallas_src>

<mosaic_0001>
module attributes {stable_mosaic.version = 11 : i64} {
  func.func @_stats_kernel(%arg0: i32, %arg1: i32, %arg2: memref<1x4x256xf32, #tpu.memory_space<vmem>>, %arg3: memref<8x4xf32, #tpu.memory_space<vmem>>, %arg4: memref<1x8x1xf32, #tpu.memory_space<vmem>>, %arg5: memref<1x8x1xf32, #tpu.memory_space<vmem>>) attributes {dimension_semantics = [#tpu.dimension_semantics<parallel>, #tpu.dimension_semantics<arbitrary>], iteration_bounds = array<i64: 2, 1>, scalar_prefetch = 0 : i64, scratch_operands = 0 : i64, tpu.core_type = #tpu.core_type<tc>, window_params = [{transform_indices = @transform_0, window_bounds = array<i64: 1, 4, 256>}, {pipeline_mode = #tpu.pipeline_mode<synchronous>, transform_indices = @transform_1, window_bounds = array<i64: 8, 4>}, {transform_indices = @transform_2, window_bounds = array<i64: 1, 8, 1>}, {transform_indices = @transform_3, window_bounds = array<i64: 1, 8, 1>}]} {
    %c0_i32 = arith.constant 0 : i32
    %0 = arith.cmpi eq, %arg1, %c0_i32 : i32
    %1 = arith.extui %0 : i1 to i32
    %c0_i32_0 = arith.constant 0 : i32
    %2 = arith.cmpi ne, %1, %c0_i32_0 : i32
    scf.if %2 {
      %cst_20 = arith.constant 0.000000e+00 : f32
      %26 = vector.broadcast %cst_20 : f32 to vector<8x1xf32>
      %c0_21 = arith.constant 0 : index
      %c0_22 = arith.constant 0 : index
      %c0_23 = arith.constant 0 : index
      %27 = vector.load %arg4[%c0_21, %c0_22, %c0_23] : memref<1x8x1xf32, #tpu.memory_space<vmem>>, vector<1x8x1xf32>
      %28 = vector.shape_cast %27 : vector<1x8x1xf32> to vector<8x1xf32>
      %29 = vector.shape_cast %26 : vector<8x1xf32> to vector<1x8x1xf32>
      tpu.vector_store %arg4[%c0_21, %c0_22, %c0_23], %29 {strides = array<i32>} : memref<1x8x1xf32, #tpu.memory_space<vmem>>, vector<1x8x1xf32>,
      %cst_24 = arith.constant 0.000000e+00 : f32
      %30 = vector.broadcast %cst_24 : f32 to vector<8x1xf32>
      %c0_25 = arith.constant 0 : index
      %c0_26 = arith.constant 0 : index
      %c0_27 = arith.constant 0 : index
      %31 = vector.load %arg5[%c0_25, %c0_26, %c0_27] : memref<1x8x1xf32, #tpu.memory_space<vmem>>, vector<1x8x1xf32>
      %32 = vector.shape_cast %31 : vector<1x8x1xf32> to vector<8x1xf32>
      %33 = vector.shape_cast %30 : vector<8x1xf32> to vector<1x8x1xf32>
      tpu.vector_store %arg5[%c0_25, %c0_26, %c0_27], %33 {strides = array<i32>} : memref<1x8x1xf32, #tpu.memory_space<vmem>>, vector<1x8x1xf32>,
    } else {
    }
    %c0 = arith.constant 0 : index
    %c0_1 = arith.constant 0 : index
    %c0_2 = arith.constant 0 : index
    %3 = vector.load %arg2[%c0, %c0_1, %c0_2] : memref<1x4x256xf32, #tpu.memory_space<vmem>>, vector<1x4x256xf32>
    %4 = vector.shape_cast %3 : vector<1x4x256xf32> to vector<4x256xf32>
    %cst = arith.constant 0.000000e+00 : f32
    %5 = vector.broadcast %cst : f32 to vector<4x256xf32>
    %6 = arith.maximumf %4, %5 : vector<4x256xf32>
    %c0_3 = arith.constant 0 : index
    %c0_4 = arith.constant 0 : index
    %7 = vector.load %arg3[%c0_3, %c0_4] : memref<8x4xf32, #tpu.memory_space<vmem>>, vector<8x4xf32>
    %cst_5 = arith.constant dense<0.000000e+00> : vector<8x256xf32>
    %8 = tpu.matmul %7, %6, %cst_5 {dimension_numbers = #tpu.dot_dimension_numbers<[1], [0], [0], [1], [0, 0, 1, 1], [], []>} : vector<8x4xf32>, vector<4x256xf32>, vector<8x256xf32> -> vector<8x256xf32>
    %c0_6 = arith.constant 0 : index
    %c0_7 = arith.constant 0 : index
    %c0_8 = arith.constant 0 : index
    %9 = vector.load %arg4[%c0_6, %c0_7, %c0_8] : memref<1x8x1xf32, #tpu.memory_space<vmem>>, vector<1x8x1xf32>
    %10 = vector.shape_cast %9 : vector<1x8x1xf32> to vector<8x1xf32>
    %cst_9 = arith.constant dense<0.000000e+00> : vector<8xf32>
    %11 = vector.multi_reduction <add>, %8, %cst_9 [1] : vector<8x256xf32> to vector<8xf32>
    %12 = vector.shape_cast %11 : vector<8xf32> to vector<8x1xf32>
    %13 = arith.addf %10, %12 : vector<8x1xf32>
    %c0_10 = arith.constant 0 : index
    %c0_11 = arith.constant 0 : index
    %c0_12 = arith.constant 0 : index
    %14 = vector.load %arg4[%c0_10, %c0_11, %c0_12] : memref<1x8x1xf32, #tpu.memory_space<vmem>>, vector<1x8x1xf32>
    %15 = vector.shape_cast %14 : vector<1x8x1xf32> to vector<8x1xf32>
    %16 = vector.shape_cast %13 : vector<8x1xf32> to vector<1x8x1xf32>
    tpu.vector_store %arg4[%c0_10, %c0_11, %c0_12], %16 {strides = array<i32>} : memref<1x8x1xf32, #tpu.memory_space<vmem>>, vector<1x8x1xf32>,
    %c0_13 = arith.constant 0 : index
    %c0_14 = arith.constant 0 : index
    %c0_15 = arith.constant 0 : index
    %17 = vector.load %arg5[%c0_13, %c0_14, %c0_15] : memref<1x8x1xf32, #tpu.memory_space<vmem>>, vector<1x8x1xf32>
    %18 = vector.shape_cast %17 : vector<1x8x1xf32> to vector<8x1xf32>
    %19 = arith.mulf %8, %8 : vector<8x256xf32>
    %cst_16 = arith.constant dense<0.000000e+00> : vector<8xf32>
    %20 = vector.multi_reduction <add>, %19, %cst_16 [1] : vector<8x256xf32> to vector<8xf32>
    %21 = vector.shape_cast %20 : vector<8xf32> to vector<8x1xf32>
    %22 = arith.addf %18, %21 : vector<8x1xf32>
    %c0_17 = arith.constant 0 : index
    %c0_18 = arith.constant 0 : index
    %c0_19 = arith.constant 0 : index
    %23 = vector.load %arg5[%c0_17, %c0_18, %c0_19] : memref<1x8x1xf32, #tpu.memory_space<vmem>>, vector<1x8x1xf32>
    %24 = vector.shape_cast %23 : vector<1x8x1xf32> to vector<8x1xf32>
    %25 = vector.shape_cast %22 : vector<8x1xf32> to vector<1x8x1xf32>
    tpu.vector_store %arg5[%c0_17, %c0_18, %c0_19], %25 {strides = array<i32>} : memref<1x8x1xf32, #tpu.memory_space<vmem>>, vector<1x8x1xf32>,
    return
  }
  func.func @transform_0(%arg0: i32, %arg1: i32) -> (i32, i32, i32) {
    %c0_i32 = arith.constant 0 : i32
    %c0_i32_0 = arith.constant 0 : i32
    return %arg0, %c0_i32, %arg1 : i32, i32, i32
  }
  func.func @transform_1(%arg0: i32, %arg1: i32) -> (i32, i32) {
    %c0_i32 = arith.constant 0 : i32
    %c0_i32_0 = arith.constant 0 : i32
    %c0_i32_1 = arith.constant 0 : i32
    return %c0_i32, %c0_i32_0 : i32, i32
  }
  func.func @transform_2(%arg0: i32, %arg1: i32) -> (i32, i32, i32) {
    %c0_i32 = arith.constant 0 : i32
    %c0_i32_0 = arith.constant 0 : i32
    %c0_i32_1 = arith.constant 0 : i32
    return %arg0, %c0_i32, %c0_i32_0 : i32, i32, i32
  }
  func.func @transform_3(%arg0: i32, %arg1: i32) -> (i32, i32, i32) {
    %c0_i32 = arith.constant 0 : i32
    %c0_i32_0 = arith.constant 0 : i32
    %c0_i32_1 = arith.constant 0 : i32
    return %arg0, %c0_i32, %c0_i32_0 : i32, i32, i32
  }
}

</mosaic_0001>

<bundles_post_ra>
// kernel: tpu_custom_call.1
= control target key start
LH: loop header
LB: loop body
LE: loop exit
PB: predicated region body
PF: predicated region fallthrough
CT: control target
= control target key end

     0   :  { %9 = vsyncpa [#allocation3], 0  ;;  %s677_s0 = inlined_call_operand.hbm [shape: f32[2,4,256], index: 0, kind: input, shape index: {}]   ;;  %s678_s1 = inlined_call_operand.vmem [shape: f32[8,4], index: 1, kind: input, shape index: {}]   ;;  %s679_s2 = inlined_call_operand.vmem [shape: f32[2,8,1], index: 2, kind: output, shape index: {0}]   ;;  %s680_s3 = inlined_call_operand.vmem [shape: f32[2,8,1], index: 3, kind: output, shape index: {1}]  }
   0x1   :  { %11 = vsyncpa [#allocation3 + $0x1], 0  ;;  %s579_s12 = smov 0   ;;  %s581_s13 = smov 0  }
   0x2   :  { %s583_s14 = smov 0   ;;  %s585_s15 = smov 0  }
   0x3   :  { %s587_s16 = smov 0   ;;  %s589_s17 = smov 0  }
   0x4 LB: > { %s402_s18 = sadd.s32 4294967295, %s556_s17   ;;  %s29_s19 = sadd.s32 1, %s552_s16  ;;  %s556_s17 = sphi %s589_s17, %s17_s17   ;;  %s552_s16 = sphi %s587_s16, %s687_s16   ;;  %s548_s15 = sphi %s585_s15, %s686_s15   ;;  %s544_s14 = sphi %s583_s14, %s685_s14   ;;  %s540_s13 = sphi %s581_s13, %s684_s13   ;;  %s536_s12 = sphi %s579_s12, %s683_s12  }
   0x5   : > { %p31_p0 = scmp.ge.s32.totalorder %s29_s19, 2  ;;  %s38_s20 = sadd.s32 1, %s544_s14 }
   0x6   : > { %p45_p1 = scmp.ne.s32.totalorder %s544_s14, %s540_s13  ;;  %p46_p2 = scmp.eq.s32.totalorder %s556_s17, 0 }
   0x7   : > { %s689_s19 = smov (%p31_p0, %s29_s19), 0  ;;  %p51_p4 = scmp.ne.s32.totalorder %s540_s13, %s536_s12 }
   0x8   : > { %p615_p3 = por %p46_p2, %p45_p1  ;;  %s33_s22 = ssub.s32 %s552_s16, %s689_s19 }
   0x9   : > { %p52_p5 = scmp.eq.s32.totalorder %s402_s18, 0  ;;  %p36_p6 = scmp.eq.s32.totalorder %s33_s22, 0 }
   0xa   : > { %p426_p8 = scmp.lt.s32.totalorder %s556_s17, 2  ;;  %s151_s25 = sand.u32 1, %s544_s14  }
   0xb   : > { %p622_p7 = por %p52_p5, %p51_p4  ;;  %s419_s26 = sshll.u32 %s552_s16, 3 }
   0xc   : > { %s628_s24 = scalar_select %p36_p6, %s544_s14, %s38_s20  }
   0xd   : > { %s406_s27 = sshll.u32 %s151_s25, 3  ;;  %s162_s30 = scalar_lea.hbm %s677_s0, %s419_s26 }
   0xe   : > { %s164_s4 = sshll.u32 %s162_s30, 4  ;;  %s155_s5 = scalar_lea.vmem [#allocation2], %s406_s27  ;;  %s165_s4 = int_to_ptr.hbm [resolvable:$true] %s164_s4 }
   0xf   : > { %s166_s6 = sshll.u32 %s155_s5, 4  ;;  %p423_p9 = pnand %p426_p8, %p615_p3  ;;  %s167_s6 = int_to_ptr.vmem [resolvable:$true] %s166_s6 }
  0x10   : > { %p409_p10 = scmp.ge.s32.totalorder %s556_s17, 1  ;;  %p171_p11 = scmp.lt.s32.totalorder %s556_s17, 3 }
  0x11   : > { %s152_s7 = scalar_lea.sflag [#allocation3], %s151_s25 }
  0x12   : > { %425 = dma.hbm_to_vmem [thread:$0]  (!%p423_p9), %s165_s4, 128, %s167_s6, %s152_s7  }
  0x13   : > { %p172_p12 = pnand %p409_p10, %p171_p11 }
  0x14   : > { %s177_s8 = sand.u32 (!%p172_p12), 1, %s540_s13  }
  0x15   : > { %175 = sbr.rel (%p172_p12) target bundleno = 294 (0x126), region = 28  ;;  %s410_s9 = sshll.u32 (!%p172_p12), %s177_s8, 3 }
  0x16   : > { %s178_s10 = scalar_lea.sflag (!%p172_p12), [#allocation3], %s177_s8  ;;  %s181_s11 = scalar_lea.vmem (!%p172_p12), [#allocation2], %s410_s9 }
  0x1a   : > { %531 = dma.done.wait (%p622_p7), %s178_s10, 128  }
  0x1b   : > { %533 = vsyncadd (%p622_p7), %s178_s10, 4294967168  ;;  %v224_v0 = vld [vmem:[%s181_s11] sm:$0xff]  ;;  %vm235_vm0 = vcmask 1043456   ;;  %v226_v2 = vld [vmem:[%s678_s1] sm:$0xff]  ;;  %vm231_vm1 = vcmask 31744   ;;  %p209_p13 = scmp.lt.s32.totalorder %s548_s15, 1 }
  0x1c   : > { %v225_v1 = vmax.f32 %v224_v0, 0.0  ;;  %vm221_vm2 = vcmask 7168   ;;  %v558_v5 = vmov 0.0  }
  0x1d   : > { %s691_s15 = smov (!%p209_p13, %s548_s15), 1 }
  0x1e   : > { %228 = vst [vmem:[#allocation1] ss:$2 sm:$0xff] %v225_v1  ;;  %s411_s20 = sshll.u32 %s691_s15, 3 }
  0x1f   : > { %s212_s23 = scalar_lea.vmem %s679_s2, %s411_s20  ;;  %s216_s27 = scalar_lea.vmem %s680_s3, %s411_s20 }
  0x20   : > { %222 = vst.msk [vmem:[%s212_s23] sm:$0xff] %vm221_vm2, %v558_v5 }
  0x21   : > { %223 = vst.msk [vmem:[%s216_s27] sm:$0xff] %vm221_vm2, %v558_v5 }
  0x25   : > { %v229_v3 = vld.sshfl [vmem:[#allocation1] sm:$0xff pattern:$0x75316420]  ;;  %v230_v4 = vld.sshfl [vmem:[#allocation1 + $0x8] sm:$0xff pattern:$0x75316420] }
  0x26   : > { %413 = vmatpush.msk.msra.mxu0 %vm235_vm0, %v229_v3  ;;  %415 = vmatpush.msk.msra.mxu1 %vm235_vm0, %v230_v4 }
  0x27   : > { %414 = vmatmul.msk.f32.vlgmr.msra.gmra.mxu0 %vm231_vm1, %v226_v2  ;;  %416 = vmatmul.msk.f32.vlgmr.msra.gmra.mxu1 %vm231_vm1, %v226_v2  ;;  %v280_v12 = vld [vmem:[%s212_s23] sm:$0xff] }
  0x28   : > { %v287_v15 = vld [vmem:[%s216_s27] sm:$0xff] }
  0xa4   : > { %v257_v6 = vpop.f32.mrf.mxu0  ;;  %v277_v7 = vpop.f32.mrf.mxu1 }
  0xa5   : > { %v281_v8 = vadd.f32 %v277_v7, %v257_v6  ;;  %v288_v9 = vmul.f32 %v257_v6, %v257_v6  ;;  %v289_v10 = vmul.f32 %v277_v7, %v277_v7 }
  0xa7   : > { %282 = vadd.xlane.f32.xlu0 %v281_v8  ;;  %v290_v11 = vadd.f32 %v289_v10, %v288_v9 }
  0xaf   : > { %291 = vadd.xlane.f32.xlu0 %v290_v11 }
 0x11a   : > { %v283_v13 = vpop.xlane.xlu0 %282 }
 0x11b   : > { %v284_v14 = vadd.f32 %v283_v13, %v280_v12 }
 0x11d   : > { %286 = vst.msk [vmem:[%s212_s23] sm:$0xff] %vm221_vm2, %v284_v14 }
 0x122   : > { %v292_v16 = vpop.xlane.xlu0 %291 }
 0x123   : > { %v293_v17 = vadd.f32 %v292_v16, %v287_v15 }
 0x125   : > { %294 = vst.msk [vmem:[%s216_s27] sm:$0xff] %vm221_vm2, %v293_v17 }
 0x126 PF: > { %s17_s17 = sadd.s32 1, %s556_s17   ;;  %s683_s12 = smov %s540_s13 }
 0x127   : > { %p14_p0 = scmp.ge.s32.totalorder %s17_s17, 4   ;;  %s684_s13 = smov %s544_s14 }
 0x128   : > { %s685_s14 = smov %s628_s24  ;;  %s686_s15 = smov %s552_s16 }
 0x129   : > { %s687_s16 = smov %s689_s19  ;;  %16 = sbr.rel (!%p14_p0) target bundleno = 4 (0x4), region = 84 }
 0x12e   :  { %328 = vsyncpa [#allocation3], 1 }
 0x12f   :  { %330 = vsyncpa [#allocation3 + $0x1], 1 }

</bundles_post_ra>
